<compile_context>
chip_gen: v6e
topology: v6e:2x2x1
jax: 0.10.0
libtpu: 0.0.40
codegen_flags: <defaults>
</compile_context>

<pallas_src>
import jax
import jax.numpy as jnp
import numpy as np
from jax.experimental import pallas as pl
from jax.experimental.pallas import tpu as pltpu

# TODO(synk): PyTorch `dtype=float` means float64; TPU Pallas has no fp64, so
# we cast to float32 instead.
TARGET_DTYPE = jnp.float32

_MAX_LANES = 2048                      # lane-dense last dim (multiple of 128)
_BLOCK_BYTES_BUDGET = 4 * 1024 * 1024  # per-block in+out bytes (Pallas double-buffers)
_VMEM_LIMIT_BYTES = 32 * 1024 * 1024   # explicit; safe on v5e/v6e (128 MiB) and v7x (64 MiB)
_MIN_PALLAS_BYTES = 1 << 15            # below this, a plain XLA convert wins


def _to_tensor_kernel(x_ref, o_ref):
    # Elementwise copy with dtype cast (the entire "forward" of ToTensor).
    o_ref[...] = x_ref[...].astype(o_ref.dtype)


def _choose_layout(n, orig_shape):
    """Pick a (rows, lanes) 2-D view of the flat array.

    Prefer lanes = a large multiple of 128 (lane-dense, unmasked stores).  If
    the element count is not a multiple of 128, fall back to the original
    trailing dim (block lane dim then equals the full extent, which is legal).
    """
    if n % 128 == 0:
        lanes = 128
        while lanes * 2 <= _MAX_LANES and n % (lanes * 2) == 0:
            lanes *= 2
    else:
        lanes = orig_shape[-1]
    return n // lanes, lanes


def _choose_tile_rows(rows, lanes, in_itemsize, out_itemsize):
    """Row-tile size: ~_BLOCK_BYTES_BUDGET of in+out bytes per block, aligned
    to the packed-dtype sublane multiple; prefer a tile that divides `rows`
    exactly so the last block is not a masked partial block."""
    per_row = lanes * (in_itemsize + out_itemsize)
    max_rows = max(1, _BLOCK_BYTES_BUDGET // per_row)
    if rows <= max_rows:
        return rows  # single full-extent block along rows (always legal)
    # Sub-32-bit dtypes pack along sublanes: tile must be a multiple of 32/itemsize.
    align = max(8, 32 // max(1, min(in_itemsize, out_itemsize)))
    cap = max(align, (max_rows // align) * align)
    # Bounded search downward for an evenly dividing tile (trace-time only).
    search_floor = max(align, cap - 64 * align)
    for t in range(cap, search_floor - 1, -align):
        if rows % t == 0:
            return t
    # Non-dividing tile: Pallas masks the boundary block (out-of-bounds writes
    # are dropped), which is correct for an elementwise copy.
    return cap


def to_tensor(x, dtype=TARGET_DTYPE, *, min_pallas_bytes=_MIN_PALLAS_BYTES):
    """Pallas equivalent of ToTensor.forward: copy `x` into a new array of `dtype`."""
    x = jnp.asarray(x)
    orig_shape = x.shape
    n = x.size
    in_itemsize = np.dtype(x.dtype).itemsize
    out_itemsize = np.dtype(dtype).itemsize

    # Tiny / degenerate inputs: a custom call is pure launch overhead here.
    if x.ndim == 0 or n == 0 or n * max(in_itemsize, out_itemsize) < min_pallas_bytes:
        return x.astype(dtype)

    rows, lanes = _choose_layout(n, orig_shape)
    x2d = x.reshape(rows, lanes)  # free row-major reshape

    tile_r = _choose_tile_rows(rows, lanes, in_itemsize, out_itemsize)
    grid_r = pl.cdiv(rows, tile_r)

    # TODO(synk): for sub-32-bit inputs a deeper input prefetch via
    # pipeline_mode=pl.Buffered(3) on the input BlockSpec could further hide
    # the (4x larger) f32 writeback; omitted to keep the kernel minimal.
    out2d = pl.pallas_call(
        _to_tensor_kernel,
        out_shape=jax.ShapeDtypeStruct((rows, lanes), dtype),
        grid_spec=pltpu.PrefetchScalarGridSpec(
            num_scalar_prefetch=0,
            grid=(grid_r,),
            in_specs=[pl.BlockSpec((tile_r, lanes), lambda i: (i, 0))],
            out_specs=pl.BlockSpec((tile_r, lanes), lambda i: (i, 0)),
        ),
        compiler_params=pltpu.CompilerParams(
            dimension_semantics=("parallel",),  # shard the copy across TCs on v7x
            vmem_limit_bytes=_VMEM_LIMIT_BYTES,
        ),
    )(x2d)

    return out2d.reshape(orig_shape)


if __name__ == "__main__":
    key = jax.random.PRNGKey(0)
    k1, k2 = jax.random.split(key)

    # Small NCHW input (consistent with the module), integer-typed so the
    # in-kernel dtype cast is exercised.  min_pallas_bytes=0 forces the Pallas
    # path even though this input is tiny (lane-dense (1, 2048) slab).
    x = jax.random.randint(k1, (2, 4, 16, 16), minval=-5, maxval=5, dtype=jnp.int32)
    y = jax.block_until_ready(to_tensor(x, min_pallas_bytes=0))
    assert y.shape == x.shape, (y.shape, x.shape)
    assert y.dtype == TARGET_DTYPE, y.dtype
    assert bool(jnp.all(y == x.astype(TARGET_DTYPE)))

    # Larger uint8 image batch: exercises the lane-dense, row-tiled,
    # double-buffered multi-block path (lanes=2048, multiple grid steps).
    x_big = jax.random.randint(
        k2, (8, 3, 256, 256), minval=0, maxval=256, dtype=jnp.int32
    ).astype(jnp.uint8)
    y_big = jax.block_until_ready(to_tensor(x_big))
    assert y_big.shape == x_big.shape, (y_big.shape, x_big.shape)
    assert y_big.dtype == TARGET_DTYPE, y_big.dtype
    assert bool(jnp.all(y_big == x_big.astype(TARGET_DTYPE)))

    print("KERNEL_OK")
</pallas_src>

<mosaic_0001>
module attributes {stable_mosaic.version = 11 : i64} {
  func.func @_to_tensor_kernel(%arg0: i32, %arg1: memref<1x2048xi32, #tpu.memory_space<vmem>>, %arg2: memref<1x2048xf32, #tpu.memory_space<vmem>>) attributes {dimension_semantics = [#tpu.dimension_semantics<parallel>], iteration_bounds = array<i64: 1>, scalar_prefetch = 0 : i64, scratch_operands = 0 : i64, tpu.core_type = #tpu.core_type<tc>, window_params = [{transform_indices = @transform_0, window_bounds = array<i64: 1, 2048>}, {transform_indices = @transform_1, window_bounds = array<i64: 1, 2048>}]} {
    %c0 = arith.constant 0 : index
    %c0_0 = arith.constant 0 : index
    %0 = vector.load %arg1[%c0, %c0_0] : memref<1x2048xi32, #tpu.memory_space<vmem>>, vector<1x2048xi32>
    %1 = arith.sitofp %0 : vector<1x2048xi32> to vector<1x2048xf32>
    %c0_1 = arith.constant 0 : index
    %c0_2 = arith.constant 0 : index
    %2 = vector.load %arg2[%c0_1, %c0_2] : memref<1x2048xf32, #tpu.memory_space<vmem>>, vector<1x2048xf32>
    tpu.vector_store %arg2[%c0_1, %c0_2], %1 {strides = array<i32>} : memref<1x2048xf32, #tpu.memory_space<vmem>>, vector<1x2048xf32>,
    return
  }
  func.func @transform_0(%arg0: i32) -> (i32, i32) {
    %c0_i32 = arith.constant 0 : i32
    %c0_i32_0 = arith.constant 0 : i32
    return %arg0, %c0_i32 : i32, i32
  }
  func.func @transform_1(%arg0: i32) -> (i32, i32) {
    %c0_i32 = arith.constant 0 : i32
    %c0_i32_0 = arith.constant 0 : i32
    return %arg0, %c0_i32 : i32, i32
  }
}

</mosaic_0001>

<bundles_post_ra>
// kernel: tpu_custom_call.1
= control target key start
LH: loop header
LB: loop body
LE: loop exit
PB: predicated region body
PF: predicated region fallthrough
CT: control target
= control target key end

     0   :  { %6 = vsyncpa [#allocation3], 0  ;;  %s106_s0 = inlined_call_operand.hbm [shape: s32[1,2048], index: 0, kind: input, shape index: {}]   ;;  %s107_s1 = inlined_call_operand.hbm [shape: f32[1,2048], index: 1, kind: output, shape index: {}]  }
   0x1   :  { %7 = vsyncpa [#allocation4], 0  ;;  %s88_s6 = smov [#allocation2]  }
   0x2   :  { %s14_s7 = sshll.u32 %s88_s6, 4  ;;  %s15_s7 = int_to_ptr.vmem [resolvable:$true] %s14_s7 }
   0x3   :  { %s52_s8 = scalar_lea.vmem %s15_s7, 256  ;;  %p57_p1 = scmp.lt.s32.totalorder %s15_s7, %s15_s7 }
   0x4   :  { %p53_p0 = scmp.ne.s32.totalorder %s15_s7, %s52_s8  ;;  %p58_p2 = scmp.lt.s32.totalorder %s52_s8, %s52_s8 }
   0x6   :  { %p59_p3 = por %p58_p2, %p57_p1 }
   0x8   :  { %p60_p4 = pnand %p59_p3, %p53_p0 }
   0xa   :  { %63 = shalt.err (!%p60_p4)
}
   0xb   :  { %17 = dma.hbm_to_vmem [thread:$0]  %s106_s0, 256, %s15_s7, [#allocation3]  }
   0xc   :  { %84 = dma.done.wait [#allocation3], 256  }
   0xd   :  { %85 = vsyncadd [#allocation3], 4294967040  ;;  %s89_s11 = smov [#allocation5]   ;;  %v21_v0 = vld [vmem:[#allocation2] sm:$0xff]  ;;  %v22_v1 = vld [vmem:[#allocation2 + $0x8] sm:$0xff] }
   0xe   :  { %s33_s12 = sshll.u32 %s89_s11, 4  ;;  %v23_v2 = vcvt.s32.f32 %v21_v0  ;;  %v24_v3 = vcvt.s32.f32 %v22_v1  ;;  %s34_s12 = int_to_ptr.vmem [resolvable:$true] %s33_s12 }
   0xf   :  { %s64_s13 = scalar_lea.vmem %s34_s12, 256  ;;  %p69_p6 = scmp.lt.s32.totalorder %s34_s12, %s34_s12 }
  0x10   :  { %25 = vst [vmem:[#allocation5] sm:$0xff] %v23_v2  ;;  %26 = vst [vmem:[#allocation5 + $0x8] sm:$0xff] %v24_v3  ;;  %p65_p5 = scmp.ne.s32.totalorder %s34_s12, %s64_s13  ;;  %p70_p7 = scmp.lt.s32.totalorder %s64_s13, %s64_s13 }
  0x12   :  { %p71_p8 = por %p70_p7, %p69_p6 }
  0x14   :  { %p72_p9 = pnand %p71_p8, %p65_p5 }
  0x16   :  { %75 = shalt.err (!%p72_p9)
}
  0x17   :  { %36 = dma.vmem_to_hbm [thread:$0]  %s34_s12, 256, %s107_s1, [#allocation4]  }
  0x18   :  { %86 = dma.done.wait [#allocation4], 256  }
  0x19   :  { %87 = vsyncadd [#allocation4], 4294967040 }
  0x1a   :  { %40 = vsyncpa [#allocation3], 1 }
  0x1b   :  { %41 = vsyncpa [#allocation4], 1 }

</bundles_post_ra>
